<compile_context>
chip_gen: v7x
topology: tpu7x:2x2x1
jax: 0.10.0
libtpu: 0.0.40
codegen_flags: <defaults>
</compile_context>

<pallas_src>
import jax
import jax.numpy as jnp
from jax.experimental import pallas as pl
from jax.experimental.pallas import tpu as pltpu

H = 16  # lstm input / hidden dim (fixed by the module)


def drqn2_kernel(x_ref, wl_ref, wm_ref, s_ref, q_ref, hc_ref):
    T = x_ref.shape[0]
    A = q_ref.shape[1]

    # Static-slice views of the packed parameter slabs (row starts 8-aligned).
    wih = wl_ref[0:16, :]                  # (16, 64), gate order (i,f,o,g)
    whh = wl_ref[16:32, :]                 # (16, 64), gate order (i,f,o,g)
    w_conv = wm_ref[0:27, 0:16]            # (27, 16)
    w_fc1 = wm_ref[32:48, 0:16]            # (16, 16)
    w_fc2 = wm_ref[48:64, 0:A]             # (16, A)

    b_conv = s_ref[0:1, 0:16]
    b_gate = s_ref[0:1, 16:80]             # bih + bhh, gate order (i,f,o,g)
    b_fc1 = s_ref[0:1, 80:96]
    b_fc2 = s_ref[0:1, 96:96 + A]
    h = s_ref[1:2, 0:H]                    # h0
    c = s_ref[2:3, 0:H]                    # c0

    # conv1 (+ relu): full-receptive-field 3x3 conv expressed as a matmul.
    feat = jnp.maximum(
        jnp.dot(x_ref[...], w_conv, preferred_element_type=jnp.float32) + b_conv,
        0.0)                                                        # (T, 16)

    # LSTM input projection hoisted out of the recurrence (single matmul).
    xgates = jnp.dot(feat, wih, preferred_element_type=jnp.float32) + b_gate  # (T, 64)

    # LSTM recurrence, fully unrolled (T static): only h @ whh + elementwise
    # gate math remains on the serial chain; all slices are static.
    hs = []
    for t in range(T):
        g = xgates[t:t + 1, :] + jnp.dot(h, whh, preferred_element_type=jnp.float32)
        sig = jax.nn.sigmoid(g[:, 0:3 * H])          # fused i, f, o sigmoid
        i_g = sig[:, 0:H]
        f_g = sig[:, H:2 * H]
        o_g = sig[:, 2 * H:3 * H]
        g_g = jnp.tanh(g[:, 3 * H:4 * H])
        c = f_g * c + i_g * g_g
        h = o_g * jnp.tanh(c)
        hs.append(h)
    hseq = jnp.concatenate(hs, axis=0)               # (T, 16), held in vregs

    hc_ref[...] = jnp.concatenate([h, c], axis=0)    # (2, 16)

    # fc1 + relu, fc2 (batched across the whole sequence after the loop).
    h4 = jnp.maximum(
        jnp.dot(hseq, w_fc1, preferred_element_type=jnp.float32) + b_fc1, 0.0)
    q_ref[...] = jnp.dot(h4, w_fc2, preferred_element_type=jnp.float32) + b_fc2


def _permute_gates(w):
    """Reorder the 4H gate axis from PyTorch (i, f, g, o) to (i, f, o, g)."""
    i, f, g, o = jnp.split(w, 4, axis=-1)
    return jnp.concatenate([i, f, o, g], axis=-1)


def drqn2_forward(x, hidden, params):
    """x: (T, 3, 3, 3) float32 NCHW; hidden: (h0, c0) each (1, 1, 16)."""
    T = x.shape[0]
    A = params["w_fc2"].shape[1]
    W = max(16, A)

    x_flat = x.reshape(T, 27).astype(jnp.float32)
    h0 = hidden[0].reshape(1, H).astype(jnp.float32)
    c0 = hidden[1].reshape(1, H).astype(jnp.float32)

    # LSTM weight slab (32, 64): rows 0:16 = W_ih^T, 16:32 = W_hh^T, gates (i,f,o,g).
    w_lstm = jnp.concatenate([_permute_gates(params["w_ih"]),
                              _permute_gates(params["w_hh"])], axis=0)

    # MLP weight slab (64, W): conv rows 0:27 (padded to 32), fc1 rows 32:48,
    # fc2 rows 48:64 -- every section starts on an 8-sublane boundary.
    def pad_to(w, rows, cols):
        return jnp.pad(w, ((0, rows - w.shape[0]), (0, cols - w.shape[1])))

    w_mlp = jnp.concatenate([pad_to(params["w_conv"], 32, W),
                             pad_to(params["w_fc1"], 16, W),
                             pad_to(params["w_fc2"], 16, W)], axis=0)

    # Small slab (3, 96+A): row 0 = all biases (gate bias premerged), rows 1-2
    # carry the initial hidden/cell state, so the kernel needs only 4 inputs.
    SW = 96 + A
    b_gate = _permute_gates(params["b_ih"] + params["b_hh"])             # (1, 64)
    biases = jnp.concatenate([params["b_conv"], b_gate,
                              params["b_fc1"], params["b_fc2"]], axis=1)  # (1, SW)
    small = jnp.concatenate([biases,
                             jnp.pad(h0, ((0, 0), (0, SW - H))),
                             jnp.pad(c0, ((0, 0), (0, SW - H)))], axis=0)  # (3, SW)

    vspec = pl.BlockSpec(memory_space=pltpu.MemorySpace.VMEM)
    q, hc = pl.pallas_call(
        drqn2_kernel,
        out_shape=(jax.ShapeDtypeStruct((T, A), jnp.float32),
                   jax.ShapeDtypeStruct((2, H), jnp.float32)),
        in_specs=[vspec] * 4,
        out_specs=(vspec, vspec),
    )(x_flat, w_lstm, w_mlp, small)

    # Match PyTorch shapes: Q is (T, 1, N_action), hidden is ((1,1,16), (1,1,16)).
    return q.reshape(T, 1, A), (hc[0].reshape(1, 1, H), hc[1].reshape(1, 1, H))


def drqn2_reference(x, hidden, params):
    """Pure-JAX reference matching the PyTorch forward (original gate order)."""
    T = x.shape[0]
    feat = jnp.maximum(x.reshape(T, 27) @ params["w_conv"] + params["b_conv"], 0.0)
    h = hidden[0].reshape(1, H)
    c = hidden[1].reshape(1, H)
    hs = []
    for t in range(T):
        x_t = feat[t:t + 1]
        gates = x_t @ params["w_ih"] + params["b_ih"] + h @ params["w_hh"] + params["b_hh"]
        i_g = jax.nn.sigmoid(gates[:, 0:H])
        f_g = jax.nn.sigmoid(gates[:, H:2 * H])
        g_g = jnp.tanh(gates[:, 2 * H:3 * H])
        o_g = jax.nn.sigmoid(gates[:, 3 * H:4 * H])
        c = f_g * c + i_g * g_g
        h = o_g * jnp.tanh(c)
        hs.append(h)
    hseq = jnp.concatenate(hs, axis=0)
    h4 = jnp.maximum(hseq @ params["w_fc1"] + params["b_fc1"], 0.0)
    q = h4 @ params["w_fc2"] + params["b_fc2"]
    return q.reshape(T, 1, -1), (h.reshape(1, 1, H), c.reshape(1, 1, H))


def init_params(key, n_action):
    """Deterministic parameter init with PyTorch-shaped weights (transposed for x @ W)."""
    ks = jax.random.split(key, 10)

    def u(k, shape, fan_in):
        bound = 1.0 / jnp.sqrt(fan_in)
        return jax.random.uniform(k, shape, jnp.float32, -bound, bound)

    # conv1: torch weight (16, 3, 3, 3) -> flattened (27, 16)
    w_conv = u(ks[0], (16, 3 * 3 * 3), 27).T
    b_conv = u(ks[1], (1, 16), 27)
    # lstm: torch weight_ih/hh (64, 16) -> (16, 64); gate order i,f,g,o
    w_ih = u(ks[2], (4 * H, H), H).T
    b_ih = u(ks[3], (1, 4 * H), H)
    w_hh = u(ks[4], (4 * H, H), H).T
    b_hh = u(ks[5], (1, 4 * H), H)
    # fc1: (16, 16), fc2: (n_action, 16) -> (16, n_action)
    w_fc1 = u(ks[6], (16, H), H).T
    b_fc1 = u(ks[7], (1, 16), H)
    w_fc2 = u(ks[8], (n_action, 16), 16).T
    b_fc2 = u(ks[9], (1, n_action), 16)
    return dict(w_conv=w_conv, b_conv=b_conv,
                w_ih=w_ih, b_ih=b_ih, w_hh=w_hh, b_hh=b_hh,
                w_fc1=w_fc1, b_fc1=b_fc1, w_fc2=w_fc2, b_fc2=b_fc2)


if __name__ == "__main__":
    T = 8          # sequence length (number of frames)
    N_ACTION = 4

    key = jax.random.PRNGKey(0)
    k_x, k_p = jax.random.split(key)
    # input frames: (T, 3, 3, 3) NCHW — 3x3 RGB images (lstm input_size=16
    # forces the conv output to be 16 features, i.e. 3x3 spatial input)
    x = jax.random.uniform(k_x, (T, 3, 3, 3), jnp.float32)
    hidden = (jnp.zeros((1, 1, H), jnp.float32), jnp.zeros((1, 1, H), jnp.float32))
    params = init_params(k_p, N_ACTION)

    fwd = jax.jit(drqn2_forward)
    q, (h_out, c_out) = fwd(x, hidden, params)
    jax.block_until_ready((q, h_out, c_out))

    q_ref, (h_ref, c_ref) = drqn2_reference(x, hidden, params)
    assert q.shape == (T, 1, N_ACTION)
    assert h_out.shape == (1, 1, H) and c_out.shape == (1, 1, H)
    assert jnp.allclose(q, q_ref, atol=1e-5, rtol=1e-5)
    assert jnp.allclose(h_out, h_ref, atol=1e-5, rtol=1e-5)
    assert jnp.allclose(c_out, c_ref, atol=1e-5, rtol=1e-5)

    print("KERNEL_OK")
</pallas_src>

<mosaic_0001>
module attributes {stable_mosaic.version = 11 : i64} {
  func.func @drqn2_kernel(%arg0: memref<8x27xf32, #tpu.memory_space<vmem>>, %arg1: memref<32x64xf32, #tpu.memory_space<vmem>>, %arg2: memref<64x16xf32, #tpu.memory_space<vmem>>, %arg3: memref<3x100xf32, #tpu.memory_space<vmem>>, %arg4: memref<8x4xf32, #tpu.memory_space<vmem>>, %arg5: memref<2x16xf32, #tpu.memory_space<vmem>>) attributes {dimension_semantics = [], scalar_prefetch = 0 : i64, scratch_operands = 0 : i64, tpu.core_type = #tpu.core_type<tc>} {
    %c0 = arith.constant 0 : index
    %c0_0 = arith.constant 0 : index
    %0 = vector.load %arg1[%c0, %c0_0] : memref<32x64xf32, #tpu.memory_space<vmem>>, vector<16x64xf32>
    %c16 = arith.constant 16 : index
    %c0_1 = arith.constant 0 : index
    %1 = vector.load %arg1[%c16, %c0_1] : memref<32x64xf32, #tpu.memory_space<vmem>>, vector<16x64xf32>
    %c0_2 = arith.constant 0 : index
    %c0_3 = arith.constant 0 : index
    %2 = vector.load %arg2[%c0_2, %c0_3] : memref<64x16xf32, #tpu.memory_space<vmem>>, vector<27x16xf32>
    %c32 = arith.constant 32 : index
    %c0_4 = arith.constant 0 : index
    %3 = vector.load %arg2[%c32, %c0_4] : memref<64x16xf32, #tpu.memory_space<vmem>>, vector<16x16xf32>
    %c48 = arith.constant 48 : index
    %c0_5 = arith.constant 0 : index
    %4 = vector.load %arg2[%c48, %c0_5] : memref<64x16xf32, #tpu.memory_space<vmem>>, vector<16x4xf32>
    %c0_6 = arith.constant 0 : index
    %c0_7 = arith.constant 0 : index
    %5 = vector.load %arg3[%c0_6, %c0_7] : memref<3x100xf32, #tpu.memory_space<vmem>>, vector<1x16xf32>
    %c0_8 = arith.constant 0 : index
    %c16_9 = arith.constant 16 : index
    %6 = vector.load %arg3[%c0_8, %c16_9] : memref<3x100xf32, #tpu.memory_space<vmem>>, vector<1x64xf32>
    %c0_10 = arith.constant 0 : index
    %c80 = arith.constant 80 : index
    %7 = vector.load %arg3[%c0_10, %c80] : memref<3x100xf32, #tpu.memory_space<vmem>>, vector<1x16xf32>
    %c0_11 = arith.constant 0 : index
    %c96 = arith.constant 96 : index
    %8 = vector.load %arg3[%c0_11, %c96] : memref<3x100xf32, #tpu.memory_space<vmem>>, vector<1x4xf32>
    %c1 = arith.constant 1 : index
    %c0_12 = arith.constant 0 : index
    %9 = vector.load %arg3[%c1, %c0_12] : memref<3x100xf32, #tpu.memory_space<vmem>>, vector<1x16xf32>
    %c2 = arith.constant 2 : index
    %c0_13 = arith.constant 0 : index
    %10 = vector.load %arg3[%c2, %c0_13] : memref<3x100xf32, #tpu.memory_space<vmem>>, vector<1x16xf32>
    %c0_14 = arith.constant 0 : index
    %c0_15 = arith.constant 0 : index
    %11 = vector.load %arg0[%c0_14, %c0_15] : memref<8x27xf32, #tpu.memory_space<vmem>>, vector<8x27xf32>
    %cst = arith.constant dense<0.000000e+00> : vector<8x16xf32>
    %12 = tpu.matmul %11, %2, %cst {dimension_numbers = #tpu.dot_dimension_numbers<[1], [0], [0], [1], [0, 0, 1, 1], [], []>} : vector<8x27xf32>, vector<27x16xf32>, vector<8x16xf32> -> vector<8x16xf32>
    %13 = vector.broadcast %5 : vector<1x16xf32> to vector<8x16xf32>
    %14 = arith.addf %12, %13 : vector<8x16xf32>
    %cst_16 = arith.constant 0.000000e+00 : f32
    %15 = vector.broadcast %cst_16 : f32 to vector<8x16xf32>
    %16 = arith.maximumf %14, %15 : vector<8x16xf32>
    %cst_17 = arith.constant dense<0.000000e+00> : vector<8x64xf32>
    %17 = tpu.matmul %16, %0, %cst_17 {dimension_numbers = #tpu.dot_dimension_numbers<[1], [0], [0], [1], [0, 0, 1, 1], [], []>} : vector<8x16xf32>, vector<16x64xf32>, vector<8x64xf32> -> vector<8x64xf32>
    %18 = vector.broadcast %6 : vector<1x64xf32> to vector<8x64xf32>
    %19 = arith.addf %17, %18 : vector<8x64xf32>
    %20 = vector.extract_strided_slice %19 {offsets = [0, 0], sizes = [1, 64], strides = [1, 1]} : vector<8x64xf32> to vector<1x64xf32>
    %cst_18 = arith.constant dense<0.000000e+00> : vector<1x64xf32>
    %21 = tpu.matmul %9, %1, %cst_18 {dimension_numbers = #tpu.dot_dimension_numbers<[1], [0], [0], [1], [0, 0, 1, 1], [], []>} : vector<1x16xf32>, vector<16x64xf32>, vector<1x64xf32> -> vector<1x64xf32>
    %22 = arith.addf %20, %21 : vector<1x64xf32>
    %23 = vector.extract_strided_slice %22 {offsets = [0, 0], sizes = [1, 48], strides = [1, 1]} : vector<1x64xf32> to vector<1x48xf32>
    %24 = arith.negf %23 : vector<1x48xf32>
    %25 = math.exp %24 : vector<1x48xf32>
    %cst_19 = arith.constant 1.000000e+00 : f32
    %26 = vector.broadcast %cst_19 : f32 to vector<1x48xf32>
    %27 = arith.addf %26, %25 : vector<1x48xf32>
    %28 = arith.divf %26, %27 : vector<1x48xf32>
    %29 = vector.extract_strided_slice %28 {offsets = [0, 0], sizes = [1, 16], strides = [1, 1]} : vector<1x48xf32> to vector<1x16xf32>
    %30 = vector.extract_strided_slice %28 {offsets = [0, 16], sizes = [1, 16], strides = [1, 1]} : vector<1x48xf32> to vector<1x16xf32>
    %31 = vector.extract_strided_slice %28 {offsets = [0, 32], sizes = [1, 16], strides = [1, 1]} : vector<1x48xf32> to vector<1x16xf32>
    %32 = vector.extract_strided_slice %22 {offsets = [0, 48], sizes = [1, 16], strides = [1, 1]} : vector<1x64xf32> to vector<1x16xf32>
    %33 = math.tanh %32 : vector<1x16xf32>
    %34 = arith.mulf %30, %10 : vector<1x16xf32>
    %35 = arith.mulf %29, %33 : vector<1x16xf32>
    %36 = arith.addf %34, %35 : vector<1x16xf32>
    %37 = math.tanh %36 : vector<1x16xf32>
    %38 = arith.mulf %31, %37 : vector<1x16xf32>
    %39 = vector.extract_strided_slice %19 {offsets = [1, 0], sizes = [1, 64], strides = [1, 1]} : vector<8x64xf32> to vector<1x64xf32>
    %cst_20 = arith.constant dense<0.000000e+00> : vector<1x64xf32>
    %40 = tpu.matmul %38, %1, %cst_20 {dimension_numbers = #tpu.dot_dimension_numbers<[1], [0], [0], [1], [0, 0, 1, 1], [], []>} : vector<1x16xf32>, vector<16x64xf32>, vector<1x64xf32> -> vector<1x64xf32>
    %41 = arith.addf %39, %40 : vector<1x64xf32>
    %42 = vector.extract_strided_slice %41 {offsets = [0, 0], sizes = [1, 48], strides = [1, 1]} : vector<1x64xf32> to vector<1x48xf32>
    %43 = arith.negf %42 : vector<1x48xf32>
    %44 = math.exp %43 : vector<1x48xf32>
    %cst_21 = arith.constant 1.000000e+00 : f32
    %45 = vector.broadcast %cst_21 : f32 to vector<1x48xf32>
    %46 = arith.addf %45, %44 : vector<1x48xf32>
    %47 = arith.divf %45, %46 : vector<1x48xf32>
    %48 = vector.extract_strided_slice %47 {offsets = [0, 0], sizes = [1, 16], strides = [1, 1]} : vector<1x48xf32> to vector<1x16xf32>
    %49 = vector.extract_strided_slice %47 {offsets = [0, 16], sizes = [1, 16], strides = [1, 1]} : vector<1x48xf32> to vector<1x16xf32>
    %50 = vector.extract_strided_slice %47 {offsets = [0, 32], sizes = [1, 16], strides = [1, 1]} : vector<1x48xf32> to vector<1x16xf32>
    %51 = vector.extract_strided_slice %41 {offsets = [0, 48], sizes = [1, 16], strides = [1, 1]} : vector<1x64xf32> to vector<1x16xf32>
    %52 = math.tanh %51 : vector<1x16xf32>
    %53 = arith.mulf %49, %36 : vector<1x16xf32>
    %54 = arith.mulf %48, %52 : vector<1x16xf32>
    %55 = arith.addf %53, %54 : vector<1x16xf32>
    %56 = math.tanh %55 : vector<1x16xf32>
    %57 = arith.mulf %50, %56 : vector<1x16xf32>
    %58 = vector.extract_strided_slice %19 {offsets = [2, 0], sizes = [1, 64], strides = [1, 1]} : vector<8x64xf32> to vector<1x64xf32>
    %cst_22 = arith.constant dense<0.000000e+00> : vector<1x64xf32>
    %59 = tpu.matmul %57, %1, %cst_22 {dimension_numbers = #tpu.dot_dimension_numbers<[1], [0], [0], [1], [0, 0, 1, 1], [], []>} : vector<1x16xf32>, vector<16x64xf32>, vector<1x64xf32> -> vector<1x64xf32>
    %60 = arith.addf %58, %59 : vector<1x64xf32>
    %61 = vector.extract_strided_slice %60 {offsets = [0, 0], sizes = [1, 48], strides = [1, 1]} : vector<1x64xf32> to vector<1x48xf32>
    %62 = arith.negf %61 : vector<1x48xf32>
    %63 = math.exp %62 : vector<1x48xf32>
    %cst_23 = arith.constant 1.000000e+00 : f32
    %64 = vector.broadcast %cst_23 : f32 to vector<1x48xf32>
    %65 = arith.addf %64, %63 : vector<1x48xf32>
    %66 = arith.divf %64, %65 : vector<1x48xf32>
    %67 = vector.extract_strided_slice %66 {offsets = [0, 0], sizes = [1, 16], strides = [1, 1]} : vector<1x48xf32> to vector<1x16xf32>
    %68 = vector.extract_strided_slice %66 {offsets = [0, 16], sizes = [1, 16], strides = [1, 1]} : vector<1x48xf32> to vector<1x16xf32>
    %69 = vector.extract_strided_slice %66 {offsets = [0, 32], sizes = [1, 16], strides = [1, 1]} : vector<1x48xf32> to vector<1x16xf32>
    %70 = vector.extract_strided_slice %60 {offsets = [0, 48], sizes = [1, 16], strides = [1, 1]} : vector<1x64xf32> to vector<1x16xf32>
    %71 = math.tanh %70 : vector<1x16xf32>
    %72 = arith.mulf %68, %55 : vector<1x16xf32>
    %73 = arith.mulf %67, %71 : vector<1x16xf32>
    %74 = arith.addf %72, %73 : vector<1x16xf32>
    %75 = math.tanh %74 : vector<1x16xf32>
    %76 = arith.mulf %69, %75 : vector<1x16xf32>
    %77 = vector.extract_strided_slice %19 {offsets = [3, 0], sizes = [1, 64], strides = [1, 1]} : vector<8x64xf32> to vector<1x64xf32>
    %cst_24 = arith.constant dense<0.000000e+00> : vector<1x64xf32>
    %78 = tpu.matmul %76, %1, %cst_24 {dimension_numbers = #tpu.dot_dimension_numbers<[1], [0], [0], [1], [0, 0, 1, 1], [], []>} : vector<1x16xf32>, vector<16x64xf32>, vector<1x64xf32> -> vector<1x64xf32>
    %79 = arith.addf %77, %78 : vector<1x64xf32>
    %80 = vector.extract_strided_slice %79 {offsets = [0, 0], sizes = [1, 48], strides = [1, 1]} : vector<1x64xf32> to vector<1x48xf32>
    %81 = arith.negf %80 : vector<1x48xf32>
    %82 = math.exp %81 : vector<1x48xf32>
    %cst_25 = arith.constant 1.000000e+00 : f32
    %83 = vector.broadcast %cst_25 : f32 to vector<1x48xf32>
    %84 = arith.addf %83, %82 : vector<1x48xf32>
    %85 = arith.divf %83, %84 : vector<1x48xf32>
    %86 = vector.extract_strided_slice %85 {offsets = [0, 0], sizes = [1, 16], strides = [1, 1]} : vector<1x48xf32> to vector<1x16xf32>
    %87 = vector.extract_strided_slice %85 {offsets = [0, 16], sizes = [1, 16], strides = [1, 1]} : vector<1x48xf32> to vector<1x16xf32>
    %88 = vector.extract_strided_slice %85 {offsets = [0, 32], sizes = [1, 16], strides = [1, 1]} : vector<1x48xf32> to vector<1x16xf32>
    %89 = vector.extract_strided_slice %79 {offsets = [0, 48], sizes = [1, 16], strides = [1, 1]} : vector<1x64xf32> to vector<1x16xf32>
    %90 = math.tanh %89 : vector<1x16xf32>
    %91 = arith.mulf %87, %74 : vector<1x16xf32>
    %92 = arith.mulf %86, %90 : vector<1x16xf32>
    %93 = arith.addf %91, %92 : vector<1x16xf32>
    %94 = math.tanh %93 : vector<1x16xf32>
    %95 = arith.mulf %88, %94 : vector<1x16xf32>
    %96 = vector.extract_strided_slice %19 {offsets = [4, 0], sizes = [1, 64], strides = [1, 1]} : vector<8x64xf32> to vector<1x64xf32>
    %cst_26 = arith.constant dense<0.000000e+00> : vector<1x64xf32>
    %97 = tpu.matmul %95, %1, %cst_26 {dimension_numbers = #tpu.dot_dimension_numbers<[1], [0], [0], [1], [0, 0, 1, 1], [], []>} : vector<1x16xf32>, vector<16x64xf32>, vector<1x64xf32> -> vector<1x64xf32>
    %98 = arith.addf %96, %97 : vector<1x64xf32>
    %99 = vector.extract_strided_slice %98 {offsets = [0, 0], sizes = [1, 48], strides = [1, 1]} : vector<1x64xf32> to vector<1x48xf32>
    %100 = arith.negf %99 : vector<1x48xf32>
    %101 = math.exp %100 : vector<1x48xf32>
    %cst_27 = arith.constant 1.000000e+00 : f32
    %102 = vector.broadcast %cst_27 : f32 to vector<1x48xf32>
    %103 = arith.addf %102, %101 : vector<1x48xf32>
    %104 = arith.divf %102, %103 : vector<1x48xf32>
    %105 = vector.extract_strided_slice %104 {offsets = [0, 0], sizes = [1, 16], strides = [1, 1]} : vector<1x48xf32> to vector<1x16xf32>
    %106 = vector.extract_strided_slice %104 {offsets = [0, 16], sizes = [1, 16], strides = [1, 1]} : vector<1x48xf32> to vector<1x16xf32>
    %107 = vector.extract_strided_slice %104 {offsets = [0, 32], sizes = [1, 16], strides = [1, 1]} : vector<1x48xf32> to vector<1x16xf32>
    %108 = vector.extract_strided_slice %98 {offsets = [0, 48], sizes = [1, 16], strides = [1, 1]} : vector<1x64xf32> to vector<1x16xf32>
    %109 = math.tanh %108 : vector<1x16xf32>
    %110 = arith.mulf %106, %93 : vector<1x16xf32>
    %111 = arith.mulf %105, %109 : vector<1x16xf32>
    %112 = arith.addf %110, %111 : vector<1x16xf32>
    %113 = math.tanh %112 : vector<1x16xf32>
    %114 = arith.mulf %107, %113 : vector<1x16xf32>
    %115 = vector.extract_strided_slice %19 {offsets = [5, 0], sizes = [1, 64], strides = [1, 1]} : vector<8x64xf32> to vector<1x64xf32>
    %cst_28 = arith.constant dense<0.000000e+00> : vector<1x64xf32>
    %116 = tpu.matmul %114, %1, %cst_28 {dimension_numbers = #tpu.dot_dimension_numbers<[1], [0], [0], [1], [0, 0, 1, 1], [], []>} : vector<1x16xf32>, vector<16x64xf32>, vector<1x64xf32> -> vector<1x64xf32>
    %117 = arith.addf %115, %116 : vector<1x64xf32>
    %118 = vector.extract_strided_slice %117 {offsets = [0, 0], sizes = [1, 48], strides = [1, 1]} : vector<1x64xf32> to vector<1x48xf32>
    %119 = arith.negf %118 : vector<1x48xf32>
    %120 = math.exp %119 : vector<1x48xf32>
    %cst_29 = arith.constant 1.000000e+00 : f32
    %121 = vector.broadcast %cst_29 : f32 to vector<1x48xf32>
    %122 = arith.addf %121, %120 : vector<1x48xf32>
    %123 = arith.divf %121, %122 : vector<1x48xf32>
    %124 = vector.extract_strided_slice %123 {offsets = [0, 0], sizes = [1, 16], strides = [1, 1]} : vector<1x48xf32> to vector<1x16xf32>
    %125 = vector.extract_strided_slice %123 {offsets = [0, 16], sizes = [1, 16], strides = [1, 1]} : vector<1x48xf32> to vector<1x16xf32>
    %126 = vector.extract_strided_slice %123 {offsets = [0, 32], sizes = [1, 16], strides = [1, 1]} : vector<1x48xf32> to vector<1x16xf32>
    %127 = vector.extract_strided_slice %117 {offsets = [0, 48], sizes = [1, 16], strides = [1, 1]} : vector<1x64xf32> to vector<1x16xf32>
    %128 = math.tanh %127 : vector<1x16xf32>
    %129 = arith.mulf %125, %112 : vector<1x16xf32>
    %130 = arith.mulf %124, %128 : vector<1x16xf32>
    %131 = arith.addf %129, %130 : vector<1x16xf32>
    %132 = math.tanh %131 : vector<1x16xf32>
    %133 = arith.mulf %126, %132 : vector<1x16xf32>
    %134 = vector.extract_strided_slice %19 {offsets = [6, 0], sizes = [1, 64], strides = [1, 1]} : vector<8x64xf32> to vector<1x64xf32>
    %cst_30 = arith.constant dense<0.000000e+00> : vector<1x64xf32>
    %135 = tpu.matmul %133, %1, %cst_30 {dimension_numbers = #tpu.dot_dimension_numbers<[1], [0], [0], [1], [0, 0, 1, 1], [], []>} : vector<1x16xf32>, vector<16x64xf32>, vector<1x64xf32> -> vector<1x64xf32>
    %136 = arith.addf %134, %135 : vector<1x64xf32>
    %137 = vector.extract_strided_slice %136 {offsets = [0, 0], sizes = [1, 48], strides = [1, 1]} : vector<1x64xf32> to vector<1x48xf32>
    %138 = arith.negf %137 : vector<1x48xf32>
    %139 = math.exp %138 : vector<1x48xf32>
    %cst_31 = arith.constant 1.000000e+00 : f32
    %140 = vector.broadcast %cst_31 : f32 to vector<1x48xf32>
    %141 = arith.addf %140, %139 : vector<1x48xf32>
    %142 = arith.divf %140, %141 : vector<1x48xf32>
    %143 = vector.extract_strided_slice %142 {offsets = [0, 0], sizes = [1, 16], strides = [1, 1]} : vector<1x48xf32> to vector<1x16xf32>
    %144 = vector.extract_strided_slice %142 {offsets = [0, 16], sizes = [1, 16], strides = [1, 1]} : vector<1x48xf32> to vector<1x16xf32>
    %145 = vector.extract_strided_slice %142 {offsets = [0, 32], sizes = [1, 16], strides = [1, 1]} : vector<1x48xf32> to vector<1x16xf32>
    %146 = vector.extract_strided_slice %136 {offsets = [0, 48], sizes = [1, 16], strides = [1, 1]} : vector<1x64xf32> to vector<1x16xf32>
    %147 = math.tanh %146 : vector<1x16xf32>
    %148 = arith.mulf %144, %131 : vector<1x16xf32>
    %149 = arith.mulf %143, %147 : vector<1x16xf32>
    %150 = arith.addf %148, %149 : vector<1x16xf32>
    %151 = math.tanh %150 : vector<1x16xf32>
    %152 = arith.mulf %145, %151 : vector<1x16xf32>
    %153 = vector.extract_strided_slice %19 {offsets = [7, 0], sizes = [1, 64], strides = [1, 1]} : vector<8x64xf32> to vector<1x64xf32>
    %cst_32 = arith.constant dense<0.000000e+00> : vector<1x64xf32>
    %154 = tpu.matmul %152, %1, %cst_32 {dimension_numbers = #tpu.dot_dimension_numbers<[1], [0], [0], [1], [0, 0, 1, 1], [], []>} : vector<1x16xf32>, vector<16x64xf32>, vector<1x64xf32> -> vector<1x64xf32>
    %155 = arith.addf %153, %154 : vector<1x64xf32>
    %156 = vector.extract_strided_slice %155 {offsets = [0, 0], sizes = [1, 48], strides = [1, 1]} : vector<1x64xf32> to vector<1x48xf32>
    %157 = arith.negf %156 : vector<1x48xf32>
    %158 = math.exp %157 : vector<1x48xf32>
    %cst_33 = arith.constant 1.000000e+00 : f32
    %159 = vector.broadcast %cst_33 : f32 to vector<1x48xf32>
    %160 = arith.addf %159, %158 : vector<1x48xf32>
    %161 = arith.divf %159, %160 : vector<1x48xf32>
    %162 = vector.extract_strided_slice %161 {offsets = [0, 0], sizes = [1, 16], strides = [1, 1]} : vector<1x48xf32> to vector<1x16xf32>
    %163 = vector.extract_strided_slice %161 {offsets = [0, 16], sizes = [1, 16], strides = [1, 1]} : vector<1x48xf32> to vector<1x16xf32>
    %164 = vector.extract_strided_slice %161 {offsets = [0, 32], sizes = [1, 16], strides = [1, 1]} : vector<1x48xf32> to vector<1x16xf32>
    %165 = vector.extract_strided_slice %155 {offsets = [0, 48], sizes = [1, 16], strides = [1, 1]} : vector<1x64xf32> to vector<1x16xf32>
    %166 = math.tanh %165 : vector<1x16xf32>
    %167 = arith.mulf %163, %150 : vector<1x16xf32>
    %168 = arith.mulf %162, %166 : vector<1x16xf32>
    %169 = arith.addf %167, %168 : vector<1x16xf32>
    %170 = math.tanh %169 : vector<1x16xf32>
    %171 = arith.mulf %164, %170 : vector<1x16xf32>
    %172 = tpu.concatenate %38, %57, %76, %95, %114, %133, %152, %171 in 0 : vector<1x16xf32>, vector<1x16xf32>, vector<1x16xf32>, vector<1x16xf32>, vector<1x16xf32>, vector<1x16xf32>, vector<1x16xf32>, vector<1x16xf32> -> vector<8x16xf32>
    %173 = tpu.concatenate %171, %169 in 0 : vector<1x16xf32>, vector<1x16xf32> -> vector<2x16xf32>
    %c0_34 = arith.constant 0 : index
    %c0_35 = arith.constant 0 : index
    %174 = vector.load %arg5[%c0_34, %c0_35] : memref<2x16xf32, #tpu.memory_space<vmem>>, vector<2x16xf32>
    tpu.vector_store %arg5[%c0_34, %c0_35], %173 {strides = array<i32>} : memref<2x16xf32, #tpu.memory_space<vmem>>, vector<2x16xf32>,
    %cst_36 = arith.constant dense<0.000000e+00> : vector<8x16xf32>
    %175 = tpu.matmul %172, %3, %cst_36 {dimension_numbers = #tpu.dot_dimension_numbers<[1], [0], [0], [1], [0, 0, 1, 1], [], []>} : vector<8x16xf32>, vector<16x16xf32>, vector<8x16xf32> -> vector<8x16xf32>
    %176 = vector.broadcast %7 : vector<1x16xf32> to vector<8x16xf32>
    %177 = arith.addf %175, %176 : vector<8x16xf32>
    %cst_37 = arith.constant 0.000000e+00 : f32
    %178 = vector.broadcast %cst_37 : f32 to vector<8x16xf32>
    %179 = arith.maximumf %177, %178 : vector<8x16xf32>
    %cst_38 = arith.constant dense<0.000000e+00> : vector<8x4xf32>
    %180 = tpu.matmul %179, %4, %cst_38 {dimension_numbers = #tpu.dot_dimension_numbers<[1], [0], [0], [1], [0, 0, 1, 1], [], []>} : vector<8x16xf32>, vector<16x4xf32>, vector<8x4xf32> -> vector<8x4xf32>
    %181 = vector.broadcast %8 : vector<1x4xf32> to vector<8x4xf32>
    %182 = arith.addf %180, %181 : vector<8x4xf32>
    %c0_39 = arith.constant 0 : index
    %c0_40 = arith.constant 0 : index
    %183 = vector.load %arg4[%c0_39, %c0_40] : memref<8x4xf32, #tpu.memory_space<vmem>>, vector<8x4xf32>
    tpu.vector_store %arg4[%c0_39, %c0_40], %182 {strides = array<i32>} : memref<8x4xf32, #tpu.memory_space<vmem>>, vector<8x4xf32>,
    return
  }
}

</mosaic_0001>

<bundles_post_ra>
// kernel: drqn2_forward.1
= control target key start
LH: loop header
LB: loop body
LE: loop exit
PB: predicated region body
PF: predicated region fallthrough
CT: control target
= control target key end

     0   :  { %v1501_v0 = vmov 0.0|0.0   ;;  %vm43_vm0 = vcmask 1042432   ;;  %vm1502_vm1 = vmmov 0   ;;  %v1503_v6 = vmov 0.0   ;;  %s1505_s14 = smov 112   ;;  %s1508_s17 = smov 96   ;;  %s1712_s2 = inlined_call_operand.vmem [shape: f32[64,16], index: 2, kind: input, shape index: {}]   ;;  %s1713_s0 = inlined_call_operand.vmem [shape: f32[8,27], index: 0, kind: input, shape index: {}]   ;;  %s1714_s1 = inlined_call_operand.vmem [shape: f32[32,64], index: 1, kind: input, shape index: {}]   ;;  %s1715_s3 = inlined_call_operand.vmem [shape: f32[3,100], index: 3, kind: input, shape index: {}]   ;;  %s1716_s5 = inlined_call_operand.vmem [shape: f32[2,16], index: 5, kind: output, shape index: {1}]   ;;  %s1717_s4 = inlined_call_operand.vmem [shape: f32[8,4], index: 4, kind: output, shape index: {0}]  }
   0x1   :  { %1387 = vmatprep.subr.bf16.mxu0 %v1501_v0  ;;  %v23_v1 = vld [vmem:[%s1712_s2] sm:$0xff]  ;;  %v24_v2 = vld [vmem:[%s1712_s2 + $0x8] sm:$0xff]  ;;  %v25_v3 = vld [vmem:[%s1712_s2 + $0x10] sm:$0xff]  ;;  %1394 = vmatprep.subr.bf16.mxu1 %v1501_v0  ;;  %vm1504_vm2 = vmmov 1   ;;  %vm39_vm4 = vcmask 220160   ;;  %vm122_vm5 = vcmask 130048  }
   0x2   :  { %v1388_v4 = vpack.c.bf16 %v24_v2, %v23_v1  ;;  %v26_v5 = vld [vmem:[%s1712_s2 + $0x18] sm:$0x7]  ;;  %1307 = vmatprep.mubr.msk.f32.mxu0 %vm1502_vm1, %v1503_v6  ;;  %1314 = vmatprep.mubr.msk.f32.mxu1 %vm1502_vm1, %v1503_v6  ;;  %vm1392_vm3 = vmpackc.low %vm43_vm0, %vm1504_vm2  ;;  %v34_v8 = vld [vmem:[%s1713_s0] sm:$0xff]  ;;  %vm1046_vm6 = vcmask 1040384   ;;  %vm1048_vm7 = vcmask 1041408   ;;  %vm1051_vm8 = vcmask 1043456  }
   0x3   :  { %v1391_v7 = vpack.c.bf16 %v26_v5, %v25_v3  ;;  %v19_v9 = vld [vmem:[%s1714_s1] sm:$0xff]  ;;  %v20_v10 = vld [vmem:[%s1714_s1 + $0x8] sm:$0xff]  ;;  %v21_v12 = vld [vmem:[%s1714_s1 + $0x10] sm:$0xff]  ;;  %vm1053_vm9 = vcmask 1044480   ;;  %vm1055_vm10 = vcmask 1045504   ;;  %s1509_s22 = smov 48  }
   0x4   :  { %1389 = vmatpush3.bf16.msra.mxu0 %v1388_v4  ;;  %v1395_v11 = vpack.c.bf16 %v20_v10, %v19_v9  ;;  %v22_v13 = vld [vmem:[%s1714_s1 + $0x18] sm:$0xff]  ;;  %v1587_v15 = vld [vmem:[%s1715_s3] ss:$0 sm:$0xff]  ;;  %v33_v16 = vld [vmem:[%s1715_s3 + $0x2] sm:$0x1]  ;;  %s1506_s1 = smov 16  }
   0x5   :  { %1390 = vmatprep.subr.bf16.mxu0 %v1501_v0  ;;  %v1580_v14 = vpack.c.bf16 %v22_v13, %v21_v12  ;;  %119 = vrot.lane.b32.xlu0 %v1587_v15, %s1505_s14  ;;  %v32_v21 = vld [vmem:[%s1715_s3 + $0x1] sm:$0x1]  ;;  %s1507_s3 = smov 80   ;;  %vm1057_vm11 = vcmask 1046528   ;;  %s1510_s27 = smov 32   ;;  %vm1072_vm12 = vcmask 123904  }
   0x6   :  { %1396 = vmatpush3.bf16.msra.mxu1 %v1395_v11  ;;  %278 = vrot.lane.b32.xlu1 %v33_v16, %s1506_s1  ;;  %vm1229_vm13 = vcmask 31744  }
   0x7   :  { %1397 = vmatprep.subr.bf16.mxu1 %v1501_v0 }
   0x8   :  { %1393 = vmatpush3.bf16.msk.msra.mxu0 %vm1392_vm3, %v1391_v7 }
   0x9   :  { %1400 = vmatprep.subr.bf16.mxu0 %v1501_v0 }
   0xb   :  { %1308 = vmatmul.mubr.msk.f32.vlgmr.msra.gmra.mrb[0].mxu0 %vm39_vm4, %v34_v8 }
   0xc   :  { %1328 = vmatprep.mubr.msk.f32.mxu0 %vm1502_vm1, %v1503_v6  ;;  %1402 = vmatpush3.bf16.msra.mxu0 %v1580_v14 }
   0xd   :  { %1406 = vmatprep.subr.bf16.mxu0 %v1501_v0 }
  0x77   :  { %v120_v22 = vpop.permute.xlu0 %119 }
  0x78   :  { %v279_v36 = vpop.permute.xlu1 %278 }
  0xde   :  { %v113_v17 = vpop.f32.mrb[0].mxu0 }
  0xdf   :  { %v114_v18 = vadd.f32 %v1587_v15, %v113_v17  ;;  %v1309_v19 = vpop.f32.mrb[1].mxu0 }
  0xe1   :  { %v117_v20 = vmax.f32 %v114_v18, 0.0 }
  0xe3   :  { %1315 = vmatmul.mubr.msk.f32.vlgmr.msra.gmra.mrb[0].mxu1 %vm122_vm5, %v117_v20 }
  0xe4   :  { %1399 = vmatpush3.bf16.msra.mxu1 %v1580_v14  ;;  %1321 = vmatprep.mubr.msk.f32.mxu1 %vm1502_vm1, %v1503_v6 }
  0xe5   :  { %1403 = vmatprep.subr.bf16.mxu1 %v1501_v0 }
  0xe7   :  { %1322 = vmatmul.mubr.msk.f32.vlgmr.msra.gmra.mrb[2].mxu1 %vm122_vm5, %v32_v21 }
  0xe8   :  { %1405 = vmatpush3.bf16.msra.mxu1 %v1580_v14  ;;  %1335 = vmatprep.mubr.msk.f32.mxu1 %vm1502_vm1, %v1503_v6 }
  0xe9   :  { %1409 = vmatprep.subr.bf16.mxu1 %v1501_v0 }
 0x1b6   :  { %v192_v23 = vpop.f32.mrb[0].mxu1 }
 0x1b7   :  { %v1316_v24 = vpop.f32.mrb[1].mxu1  ;;  %v1608_v25 = vadd.f32 %v192_v23, %v120_v22 }
 0x1ba   :  { %v265_v26 = vpop.f32.mrb[2].mxu1 }
 0x1bb   :  { %v269_v27 = vadd.f32 %v265_v26, %v1608_v25  ;;  %v1323_v28 = vpop.f32.mrb[3].mxu1 }
 0x1bd   :  { %1437 = vtanh.f32 %v269_v27  ;;  %v1244_v30 = vmul.f32 -1.442695, %v269_v27 }
 0x1bf   :  { %1439 = vpow2.f32 %v1244_v30 }
 0x1c7   :  { %v1438_v29 = vpop.eup %1437 }
 0x1c8   :  { %283 = vrot.lane.b32.xlu0 %v1438_v29, %s1507_s3 }
 0x1c9   :  { %v1440_v31 = vpop.eup %1439 }
 0x1ca   :  { %v273_v32 = vadd.f32 1.0, %v1440_v31 }
 0x1cc   :  { %1441 = vrcp.f32 %v273_v32 }
 0x1d6   :  { %v1442_v33 = vpop.eup %1441 }
 0x1d7   :  { %v281_v37 = vmul.f32 %v1442_v33, %v279_v36 }
 0x23a   :  { %v284_v34 = vpop.permute.xlu0 %283 }
 0x23b   :  { %v286_v35 = vmul.f32 %v1442_v33, %v284_v34 }
 0x23d   :  { %288 = vrot.lane.b32.xlu1 %v286_v35, %s1506_s1 }
 0x2af   :  { %v289_v38 = vpop.permute.xlu1 %288 }
 0x2b0   :  { %v291_v39 = vadd.f32 %v289_v38, %v281_v37 }
 0x2b2   :  { %1443 = vtanh.f32 %v291_v39  ;;  %v385_v55 = vrot.slane %v291_v39, 7 }
 0x2bc   :  { %v1444_v40 = vpop.eup %1443 }
 0x2bd   :  { %294 = vrot.lane.b32.xlu0 %v1444_v40, %s1506_s1 }
 0x32f   :  { %v295_v41 = vpop.permute.xlu0 %294 }
 0x330   :  { %v1614_v42 = vmul.f32 %v1442_v33, %v295_v41 }
 0x332   :  { %299 = vrot.lane.b32.xlu1 %v1614_v42, %s1508_s17 }
 0x3a4   :  { %v300_v43 = vpop.permute.xlu1 %299 }
 0x3a5   :  { %1329 = vmatmul.mubr.msk.f32.vlgmr.msra.gmra.mrb[2].mxu0 %vm122_vm5, %v300_v43 }
 0x3a6   :  { %1408 = vmatpush3.bf16.msra.mxu0 %v1580_v14  ;;  %1342 = vmatprep.mubr.msk.f32.mxu0 %vm1502_vm1, %v1503_v6 }
 0x3a7   :  { %1412 = vmatprep.subr.bf16.mxu0 %v1501_v0 }
 0x478   :  { %v369_v44 = vpop.f32.mrb[2].mxu0 }
 0x479   :  { %v374_v45 = vrot.slane %v369_v44, 7  ;;  %v1330_v46 = vpop.f32.mrb[3].mxu0 }
 0x47b   :  { %v376_v47 = vadd.f32 %v374_v45, %v1608_v25 }
 0x47d   :  { %1445 = vtanh.f32 %v376_v47  ;;  %v1246_v49 = vmul.f32 -1.442695, %v376_v47 }
 0x47f   :  { %1447 = vpow2.f32 %v1246_v49 }
 0x487   :  { %v1446_v48 = vpop.eup %1445 }
 0x488   :  { %389 = vrot.lane.b32.xlu0 %v1446_v48, %s1507_s3 }
 0x489   :  { %v1448_v50 = vpop.eup %1447 }
 0x48a   :  { %v380_v51 = vadd.f32 1.0, %v1448_v50 }
 0x48c   :  { %1449 = vrcp.f32 %v380_v51 }
 0x496   :  { %v1450_v52 = vpop.eup %1449 }
 0x497   :  { %v387_v56 = vmul.f32 %v1450_v52, %v385_v55 }
 0x4fa   :  { %v390_v53 = vpop.permute.xlu0 %389 }
 0x4fb   :  { %v392_v54 = vmul.f32 %v1450_v52, %v390_v53 }
 0x4fd   :  { %394 = vrot.lane.b32.xlu1 %v392_v54, %s1506_s1 }
 0x56f   :  { %v395_v57 = vpop.permute.xlu1 %394 }
 0x570   :  { %v397_v58 = vadd.f32 %v395_v57, %v387_v56 }
 0x572   :  { %1451 = vtanh.f32 %v397_v58  ;;  %v492_v13 = vrot.slane %v397_v58, 7 }
 0x57c   :  { %v1452_v59 = vpop.eup %1451 }
 0x57d   :  { %400 = vrot.lane.b32.xlu0 %v1452_v59, %s1506_s1 }
 0x5ef   :  { %v401_v60 = vpop.permute.xlu0 %400 }
 0x5f0   :  { %v403_v61 = vmul.f32 %v1450_v52, %v401_v60 }
 0x5f2   :  { %v405_v62 = vrot.slane %v403_v61, 1  ;;  %v1047_v22 = vsel %vm1046_vm6, %v1614_v42, %v403_v61 }
 0x5f4   :  { %406 = vrot.lane.b32.xlu1 %v405_v62, %s1508_s17 }
 0x666   :  { %v407_v63 = vpop.permute.xlu1 %406 }
 0x667   :  { %1336 = vmatmul.mubr.msk.f32.vlgmr.msra.gmra.mrb[4].mxu1 %vm122_vm5, %v407_v63 }
 0x668   :  { %1411 = vmatpush3.bf16.msra.mxu1 %v1580_v14  ;;  %1349 = vmatprep.mubr.msk.f32.mxu1 %vm1502_vm1, %v1503_v6 }
 0x669   :  { %1415 = vmatprep.subr.bf16.mxu1 %v1501_v0 }
 0x73a   :  { %v476_v1 = vpop.f32.mrb[4].mxu1 }
 0x73b   :  { %v481_v2 = vrot.slane %v476_v1, 6  ;;  %v1337_v3 = vpop.f32.mrb[5].mxu1 }
 0x73d   :  { %v483_v4 = vadd.f32 %v481_v2, %v1608_v25 }
 0x73f   :  { %1453 = vtanh.f32 %v483_v4  ;;  %v1248_v7 = vmul.f32 -1.442695, %v483_v4 }
 0x741   :  { %1455 = vpow2.f32 %v1248_v7 }
 0x749   :  { %v1454_v5 = vpop.eup %1453 }
 0x74a   :  { %496 = vrot.lane.b32.xlu0 %v1454_v5, %s1507_s3 }
 0x74b   :  { %v1456_v8 = vpop.eup %1455 }
 0x74c   :  { %v487_v9 = vadd.f32 1.0, %v1456_v8 }
 0x74e   :  { %1457 = vrcp.f32 %v487_v9 }
 0x758   :  { %v1458_v10 = vpop.eup %1457 }
 0x759   :  { %v494_v16 = vmul.f32 %v1458_v10, %v492_v13 }
 0x7bc   :  { %v497_v11 = vpop.permute.xlu0 %496 }
 0x7bd   :  { %v499_v12 = vmul.f32 %v1458_v10, %v497_v11 }
 0x7bf   :  { %501 = vrot.lane.b32.xlu1 %v499_v12, %s1506_s1 }
 0x831   :  { %v502_v17 = vpop.permute.xlu1 %501 }
 0x832   :  { %v504_v18 = vadd.f32 %v502_v17, %v494_v16 }
 0x834   :  { %1459 = vtanh.f32 %v504_v18  ;;  %v599_v38 = vrot.slane %v504_v18, 7 }
 0x83e   :  { %v1460_v19 = vpop.eup %1459 }
 0x83f   :  { %507 = vrot.lane.b32.xlu0 %v1460_v19, %s1506_s1 }
 0x8b1   :  { %v508_v20 = vpop.permute.xlu0 %507 }
 0x8b2   :  { %v510_v21 = vmul.f32 %v1458_v10, %v508_v20 }
 0x8b4   :  { %v512_v23 = vrot.slane %v510_v21, 2  ;;  %v1049_v24 = vsel %vm1048_vm7, %v1047_v22, %v510_v21 }
 0x8b6   :  { %513 = vrot.lane.b32.xlu1 %v512_v23, %s1508_s17 }
 0x928   :  { %v514_v26 = vpop.permute.xlu1 %513 }
 0x929   :  { %1343 = vmatmul.mubr.msk.f32.vlgmr.msra.gmra.mrb[4].mxu0 %vm122_vm5, %v514_v26 }
 0x92a   :  { %1414 = vmatpush3.bf16.msra.mxu0 %v1580_v14  ;;  %1356 = vmatprep.mubr.msk.f32.mxu0 %vm1502_vm1, %v1503_v6 }
 0x92b   :  { %1418 = vmatprep.subr.bf16.mxu0 %v1501_v0 }
 0x9fc   :  { %v583_v27 = vpop.f32.mrb[4].mxu0 }
 0x9fd   :  { %v588_v28 = vrot.slane %v583_v27, 5  ;;  %v1344_v29 = vpop.f32.mrb[5].mxu0 }
 0x9ff   :  { %v590_v30 = vadd.f32 %v588_v28, %v1608_v25 }
 0xa01   :  { %1461 = vtanh.f32 %v590_v30  ;;  %v1250_v32 = vmul.f32 -1.442695, %v590_v30 }
 0xa03   :  { %1463 = vpow2.f32 %v1250_v32 }
 0xa0b   :  { %v1462_v31 = vpop.eup %1461 }
 0xa0c   :  { %603 = vrot.lane.b32.xlu0 %v1462_v31, %s1507_s3 }
 0xa0d   :  { %v1464_v33 = vpop.eup %1463 }
 0xa0e   :  { %v594_v34 = vadd.f32 1.0, %v1464_v33 }
 0xa10   :  { %1465 = vrcp.f32 %v594_v34 }
 0xa1a   :  { %v1466_v35 = vpop.eup %1465 }
 0xa1b   :  { %v601_v39 = vmul.f32 %v1466_v35, %v599_v38 }
 0xa7e   :  { %v604_v36 = vpop.permute.xlu0 %603 }
 0xa7f   :  { %v606_v37 = vmul.f32 %v1466_v35, %v604_v36 }
 0xa81   :  { %608 = vrot.lane.b32.xlu1 %v606_v37, %s1506_s1 }
 0xaf3   :  { %v609_v40 = vpop.permute.xlu1 %608 }
 0xaf4   :  { %v611_v41 = vadd.f32 %v609_v40, %v601_v39 }
 0xaf6   :  { %1467 = vtanh.f32 %v611_v41  ;;  %v706_v59 = vrot.slane %v611_v41, 7 }
 0xb00   :  { %v1468_v42 = vpop.eup %1467 }
 0xb01   :  { %614 = vrot.lane.b32.xlu0 %v1468_v42, %s1506_s1 }
 0xb73   :  { %v615_v43 = vpop.permute.xlu0 %614 }
 0xb74   :  { %v617_v44 = vmul.f32 %v1466_v35, %v615_v43 }
 0xb76   :  { %v619_v45 = vrot.slane %v617_v44, 3  ;;  %v1050_v46 = vsel %vm43_vm0, %v1049_v24, %v617_v44 }
 0xb78   :  { %620 = vrot.lane.b32.xlu1 %v619_v45, %s1508_s17 }
 0xbea   :  { %v621_v47 = vpop.permute.xlu1 %620 }
 0xbeb   :  { %1350 = vmatmul.mubr.msk.f32.vlgmr.msra.gmra.mrb[6].mxu1 %vm122_vm5, %v621_v47 }
 0xbec   :  { %1417 = vmatpush3.bf16.msra.mxu1 %v1580_v14  ;;  %1363 = vmatprep.mubr.msk.f32.mxu1 %vm1502_vm1, %v1503_v6 }
 0xbed   :  { %1421 = vmatprep.subr.bf16.mxu1 %v1501_v0 }
 0xcbe   :  { %v690_v48 = vpop.f32.mrb[6].mxu1 }
 0xcbf   :  { %v695_v49 = vrot.slane %v690_v48, 4  ;;  %v1351_v50 = vpop.f32.mrb[7].mxu1 }
 0xcc1   :  { %v697_v51 = vadd.f32 %v695_v49, %v1608_v25 }
 0xcc3   :  { %1469 = vtanh.f32 %v697_v51  ;;  %v1252_v53 = vmul.f32 -1.442695, %v697_v51 }
 0xcc5   :  { %1471 = vpow2.f32 %v1252_v53 }
 0xccd   :  { %v1470_v52 = vpop.eup %1469 }
 0xcce   :  { %710 = vrot.lane.b32.xlu0 %v1470_v52, %s1507_s3 }
 0xccf   :  { %v1472_v54 = vpop.eup %1471 }
 0xcd0   :  { %v701_v55 = vadd.f32 1.0, %v1472_v54 }
 0xcd2   :  { %1473 = vrcp.f32 %v701_v55 }
 0xcdc   :  { %v1474_v56 = vpop.eup %1473 }
 0xcdd   :  { %v708_v60 = vmul.f32 %v1474_v56, %v706_v59 }
 0xd40   :  { %v711_v57 = vpop.permute.xlu0 %710 }
 0xd41   :  { %v713_v58 = vmul.f32 %v1474_v56, %v711_v57 }
 0xd43   :  { %715 = vrot.lane.b32.xlu1 %v713_v58, %s1506_s1 }
 0xdb5   :  { %v716_v61 = vpop.permute.xlu1 %715 }
 0xdb6   :  { %v718_v62 = vadd.f32 %v716_v61, %v708_v60 }
 0xdb8   :  { %1475 = vtanh.f32 %v718_v62 }
 0xdc2   :  { %v1476_v63 = vpop.eup %1475 }
 0xdc3   :  { %721 = vrot.lane.b32.xlu0 %v1476_v63, %s1506_s1 }
 0xe35   :  { %v722_v1 = vpop.permute.xlu0 %721 }
 0xe36   :  { %v724_v2 = vmul.f32 %v1474_v56, %v722_v1  ;;  %v28_v1 = vld [vmem:[%s1712_s2 + $0x28] sm:$0xff] }
 0xe38   :  { %v726_v3 = vrot.slane %v724_v2, 4  ;;  %v1052_v4 = vsel %vm1051_vm8, %v1050_v46, %v724_v2 }
 0xe3a   :  { %727 = vrot.lane.b32.xlu1 %v726_v3, %s1508_s17 }
 0xeac   :  { %v728_v5 = vpop.permute.xlu1 %727 }
 0xead   :  { %1357 = vmatmul.mubr.msk.f32.vlgmr.msra.gmra.mrb[6].mxu0 %vm122_vm5, %v728_v5 }
 0xeae   :  { %1420 = vmatpush3.bf16.msra.mxu0 %v1580_v14  ;;  %1370 = vmatprep.mubr.msk.f32.mxu0 %vm1502_vm1, %v1503_v6 }
 0xeaf   :  { %1424 = vmatprep.subr.bf16.mxu0 %v1501_v0  ;;  %v813_v0 = vrot.slane %v718_v62, 7 }
 0xf80   :  { %v797_v7 = vpop.f32.mrb[6].mxu0 }
 0xf81   :  { %v802_v8 = vrot.slane %v797_v7, 3  ;;  %v1358_v9 = vpop.f32.mrb[7].mxu0 }
 0xf83   :  { %v804_v10 = vadd.f32 %v802_v8, %v1608_v25 }
 0xf85   :  { %1477 = vtanh.f32 %v804_v10  ;;  %v1254_v12 = vmul.f32 -1.442695, %v804_v10 }
 0xf87   :  { %1479 = vpow2.f32 %v1254_v12 }
 0xf8f   :  { %v1478_v11 = vpop.eup %1477 }
 0xf90   :  { %817 = vrot.lane.b32.xlu0 %v1478_v11, %s1507_s3 }
 0xf91   :  { %v1480_v13 = vpop.eup %1479 }
 0xf92   :  { %v808_v16 = vadd.f32 1.0, %v1480_v13  ;;  %v29_v13 = vld [vmem:[%s1712_s2 + $0x30] sm:$0xff] }
 0xf94   :  { %1481 = vrcp.f32 %v808_v16  ;;  %v30_v16 = vld [vmem:[%s1712_s2 + $0x38] sm:$0xff] }
 0xf9e   :  { %v1482_v14 = vpop.eup %1481 }
 0xf9f   :  { %v815_v19 = vmul.f32 %v1482_v14, %v813_v0 }
0x1002   :  { %v818_v17 = vpop.permute.xlu0 %817 }
0x1003   :  { %v820_v18 = vmul.f32 %v1482_v14, %v818_v17 }
0x1005   :  { %822 = vrot.lane.b32.xlu1 %v820_v18, %s1506_s1 }
0x1077   :  { %v823_v20 = vpop.permute.xlu1 %822 }
0x1078   :  { %v825_v21 = vadd.f32 %v823_v20, %v815_v19 }
0x107a   :  { %1483 = vtanh.f32 %v825_v21  ;;  %v920_v40 = vrot.slane %v825_v21, 7 }
0x1084   :  { %v1484_v22 = vpop.eup %1483 }
0x1085   :  { %828 = vrot.lane.b32.xlu0 %v1484_v22, %s1506_s1 }
0x10f7   :  { %v829_v23 = vpop.permute.xlu0 %828 }
0x10f8   :  { %v831_v24 = vmul.f32 %v1482_v14, %v829_v23  ;;  %v1425_v14 = vpack.c.bf16 %v30_v16, %v29_v13 }
0x10fa   :  { %v833_v26 = vrot.slane %v831_v24, 5  ;;  %v1054_v27 = vsel %vm1053_vm9, %v1052_v4, %v831_v24 }
0x10fc   :  { %834 = vrot.lane.b32.xlu1 %v833_v26, %s1508_s17 }
0x116e   :  { %v835_v28 = vpop.permute.xlu1 %834 }
0x116f   :  { %1364 = vmatmul.mubr.msk.f32.vlgmr.msra.gmra.mrb[8].mxu1 %vm122_vm5, %v835_v28 }
0x1170   :  { %1377 = vmatprep.mubr.msk.f32.mxu1 %vm1502_vm1, %v1503_v6 }
0x1242   :  { %v904_v29 = vpop.f32.mrb[8].mxu1 }
0x1243   :  { %v909_v30 = vrot.slane %v904_v29, 2  ;;  %v1365_v31 = vpop.f32.mrb[9].mxu1 }
0x1245   :  { %v911_v32 = vadd.f32 %v909_v30, %v1608_v25 }
0x1247   :  { %1485 = vtanh.f32 %v911_v32  ;;  %v1256_v34 = vmul.f32 -1.442695, %v911_v32 }
0x1249   :  { %1487 = vpow2.f32 %v1256_v34 }
0x1251   :  { %v1486_v33 = vpop.eup %1485 }
0x1252   :  { %924 = vrot.lane.b32.xlu0 %v1486_v33, %s1507_s3 }
0x1253   :  { %v1488_v35 = vpop.eup %1487 }
0x1254   :  { %v915_v36 = vadd.f32 1.0, %v1488_v35 }
0x1256   :  { %1489 = vrcp.f32 %v915_v36 }
0x1260   :  { %v1490_v37 = vpop.eup %1489 }
0x1261   :  { %v922_v41 = vmul.f32 %v1490_v37, %v920_v40 }
0x12c4   :  { %v925_v38 = vpop.permute.xlu0 %924 }
0x12c5   :  { %v927_v39 = vmul.f32 %v1490_v37, %v925_v38 }
0x12c7   :  { %929 = vrot.lane.b32.xlu1 %v927_v39, %s1506_s1 }
0x1339   :  { %v930_v42 = vpop.permute.xlu1 %929 }
0x133a   :  { %v932_v43 = vadd.f32 %v930_v42, %v922_v41 }
0x133c   :  { %1491 = vtanh.f32 %v932_v43 }
0x1346   :  { %v1492_v44 = vpop.eup %1491 }
0x1347   :  { %935 = vrot.lane.b32.xlu0 %v1492_v44, %s1506_s1 }
0x13b9   :  { %v936_v45 = vpop.permute.xlu0 %935 }
0x13ba   :  { %v938_v46 = vmul.f32 %v1490_v37, %v936_v45 }
0x13bc   :  { %v940_v47 = vrot.slane %v938_v46, 6  ;;  %v1056_v48 = vsel %vm1055_vm10, %v1054_v27, %v938_v46 }
0x13be   :  { %941 = vrot.lane.b32.xlu1 %v940_v47, %s1508_s17 }
0x1430   :  { %v942_v49 = vpop.permute.xlu1 %941 }
0x1431   :  { %1371 = vmatmul.mubr.msk.f32.vlgmr.msra.gmra.mrb[8].mxu0 %vm122_vm5, %v942_v49 }
0x1432   :  { %1384 = vmatprep.mubr.msk.f32.mxu0 %vm1502_vm1, %v1503_v6  ;;  %v1027_v6 = vrot.slane %v932_v43, 7  ;;  %1426 = vmatpush3.bf16.msra.mxu0 %v1425_v14 }
0x1504   :  { %v1011_v50 = vpop.f32.mrb[8].mxu0 }
0x1505   :  { %v1016_v51 = vrot.slane %v1011_v50, 1  ;;  %v1372_v52 = vpop.f32.mrb[9].mxu0 }
0x1507   :  { %v1018_v53 = vadd.f32 %v1016_v51, %v1608_v25  ;;  %v27_v25 = vld [vmem:[%s1712_s2 + $0x20] sm:$0xff] }
0x1508   :  { %v1422_v2 = vpack.c.bf16 %v28_v1, %v27_v25 }
0x1509   :  { %1493 = vtanh.f32 %v1018_v53  ;;  %v1258_v55 = vmul.f32 -1.442695, %v1018_v53 }
0x150a   :  { %1423 = vmatpush3.bf16.msra.mxu1 %v1422_v2 }
0x150b   :  { %1495 = vpow2.f32 %v1258_v55 }
0x1513   :  { %v1494_v54 = vpop.eup %1493 }
0x1514   :  { %1031 = vrot.lane.b32.xlu0 %v1494_v54, %s1507_s3 }
0x1515   :  { %v1496_v56 = vpop.eup %1495 }
0x1516   :  { %v1022_v57 = vadd.f32 1.0, %v1496_v56 }
0x1518   :  { %1497 = vrcp.f32 %v1022_v57 }
0x1522   :  { %v1498_v58 = vpop.eup %1497 }
0x1523   :  { %v1029_v61 = vmul.f32 %v1498_v58, %v1027_v6 }
0x1586   :  { %v1032_v59 = vpop.permute.xlu0 %1031 }
0x1587   :  { %v1034_v60 = vmul.f32 %v1498_v58, %v1032_v59 }
0x1589   :  { %1036 = vrot.lane.b32.xlu1 %v1034_v60, %s1506_s1 }
0x15fb   :  { %v1037_v62 = vpop.permute.xlu1 %1036 }
0x15fc   :  { %v1039_v63 = vadd.f32 %v1037_v62, %v1029_v61 }
0x15fe   :  { %1499 = vtanh.f32 %v1039_v63  ;;  %v1063_v8 = vrot.slane %v1039_v63, 6 }
0x1608   :  { %v1500_v3 = vpop.eup %1499 }
0x1609   :  { %1042 = vrot.lane.b32.xlu0 %v1500_v3, %s1506_s1 }
0x160d   :  { %1077 = vrot.lane.b32.xlu0 %v1587_v15, %s1509_s22 }
0x1611   :  { %1153 = vrot.lane.b32.xlu0 %v1587_v15, %s1510_s27 }
0x167b   :  { %v1043_v4 = vpop.permute.xlu0 %1042 }
0x167c   :  { %v1045_v5 = vmul.f32 %v1498_v58, %v1043_v4 }
0x167e   :  { %v1058_v7 = vsel %vm1057_vm11, %v1056_v48, %v1045_v5  ;;  %v1060_v10 = vrot.slane %v1045_v5, 7 }
0x167f   :  { %1075 = vrot.lane.b32.xlu1 %v1058_v7, %s1508_s17  ;;  %v1078_v18 = vpop.permute.xlu0 %1077 }
0x1683   :  { %1064 = vrot.lane.b32.xlu1 %v1063_v8, %s1506_s1  ;;  %v1154_v22 = vpop.permute.xlu0 %1153 }
0x16f1   :  { %v1076_v9 = vpop.permute.xlu1 %1075 }
0x16f2   :  { %1378 = vmatmul.mubr.msk.f32.vlgmr.msra.gmra.mrb[10].mxu1 %vm122_vm5, %v1076_v9 }
0x16f5   :  { %v1065_v11 = vpop.permute.xlu1 %1064 }
0x16f6   :  { %v1067_v12 = vsel %vm1046_vm6, %v1060_v10, %v1065_v11 }
0x16f7   :  { %1069 = vrot.lane.b32.xlu1 %v1067_v12, %s1508_s17 }
0x1769   :  { %v1070_v17 = vpop.permute.xlu1 %1069 }
0x176a   :  { %1073 = vst.msk [vmem:[%s1716_s5] sm:$0x3] %vm1072_vm12, %v1070_v17 }
0x17c5   :  { %v1148_v0 = vpop.f32.mrb[10].mxu1 }
0x17c6   :  { %v1149_v19 = vadd.f32 %v1148_v0, %v1078_v18  ;;  %v1379_v20 = vpop.f32.mrb[11].mxu1 }
0x17c8   :  { %v1152_v21 = vmax.f32 %v1149_v19, 0.0 }
0x17ca   :  { %1385 = vmatmul.mubr.msk.f32.vlgmr.msra.gmra.mrb[10].mxu0 %vm122_vm5, %v1152_v21 }
0x189d   :  { %v1225_v23 = vpop.f32.mrb[10].mxu0 }
0x189e   :  { %v1226_v24 = vadd.f32 %v1225_v23, %v1154_v22  ;;  %v1386_v26 = vpop.f32.mrb[11].mxu0 }
0x18a0   :  { %1230 = vst.msk [vmem:[%s1717_s4] sm:$0xff] %vm1229_vm13, %v1226_v24 }

</bundles_post_ra>
